<compile_context>
chip_gen: v7x
topology: tpu7x:2x2x1
jax: 0.10.0
libtpu: 0.0.40
codegen_flags: <defaults>
</compile_context>

<pallas_src>
import jax
import jax.numpy as jnp
import numpy as np
from jax import lax
from jax.experimental import pallas as pl
from jax.experimental.pallas import tpu as pltpu


# --------------------------------------------------------------------------- #
# Pallas kernel
# --------------------------------------------------------------------------- #
def _agu_kernel(x_ref, t_ref, wexp_ref, c_ref, wk_ref, scale_ref, shift_ref,
                o_ref):
    # x_ref     : (M, 9*Cx)   im2col of zero-padded x, f32
    # t_ref     : (M, 9*Ct)   im2col of zero-padded t_up, f32
    # wexp_ref  : (9*Ct, 9*Cx) block-replicated conv_a1 weights, f32
    # c_ref     : (1,)        1.0 + conv_a1 bias (SMEM scalar)
    # wk_ref    : (9*Cx, Cp)  3x3 conv weights (Cout zero-padded to Cp), bf16
    # scale_ref : (1, Cp)     gamma / sqrt(var + eps)      (0 in padding)
    # shift_ref : (1, Cp)     beta - mean * scale          (0 in padding)
    # o_ref     : (M, Cp)     output (BN + ReLU applied), f32

    # Gate expanded directly into the im2col K layout:
    #   gexp[m, k*Cx + j] = 1 + bias + conv_a1(t_up)[pixel(m, tap k)]
    gexp = jnp.dot(t_ref[...], wexp_ref[...],
                   preferred_element_type=jnp.float32) + c_ref[0]

    # w = x + x*gate = x * (1 + gate); cast to bf16 for the MXU conv matmul.
    gated = (x_ref[...] * gexp).astype(jnp.bfloat16)

    # Single im2col matmul for the whole (batch-folded) output tile.
    acc = jnp.dot(gated, wk_ref[...], preferred_element_type=jnp.float32)

    # BatchNorm (eval, folded affine) + ReLU, single lane-dense store.
    y = jnp.maximum(acc * scale_ref[...] + shift_ref[...], 0.0)
    o_ref[...] = y.astype(o_ref.dtype)


# --------------------------------------------------------------------------- #
# Plain-JAX glue
# --------------------------------------------------------------------------- #
def bilinear_resize_nchw(t, out_h, out_w):
    """Matches F.interpolate(t, size, mode='bilinear', align_corners=False)."""
    def src(out_size, in_size):
        scale = in_size / out_size
        s = (jnp.arange(out_size, dtype=jnp.float32) + 0.5) * scale - 0.5
        s = jnp.maximum(s, 0.0)
        i0 = jnp.minimum(jnp.floor(s).astype(jnp.int32), in_size - 1)
        i1 = jnp.minimum(i0 + 1, in_size - 1)
        lam = s - i0.astype(jnp.float32)
        return i0, i1, lam

    h0, h1, lh = src(out_h, t.shape[2])
    w0, w1, lw = src(out_w, t.shape[3])
    rows0 = t[:, :, h0, :]
    rows1 = t[:, :, h1, :]
    top = rows0[..., w0] * (1.0 - lw) + rows0[..., w1] * lw
    bot = rows1[..., w0] * (1.0 - lw) + rows1[..., w1] * lw
    return top * (1.0 - lh)[:, None] + bot * lh[:, None]


def agu_forward(x_nchw, t_nchw, params):
    n, cx, h, w = x_nchw.shape
    ct = t_nchw.shape[1]
    cout = params['conv_w'].shape[0]
    ho = (h - 1) // 2 + 1                  # stride-2, pad-1, k=3 output size
    wo = (w - 1) // 2 + 1
    m = n * ho * wo
    cp = ((cout + 127) // 128) * 128       # lane-dense output width

    # bilinear upsample + layout glue (NHWC, zero pad)
    t_up = bilinear_resize_nchw(t_nchw, h, w)                      # (N,Ct,H,W)
    pad = ((0, 0), (1, 1), (1, 1), (0, 0))
    x_p = jnp.pad(jnp.transpose(x_nchw, (0, 2, 3, 1)), pad)        # (N,H+2,W+2,Cx)
    t_p = jnp.pad(jnp.transpose(t_up, (0, 2, 3, 1)), pad)          # (N,H+2,W+2,Ct)

    def im2col(a):                          # -> (N*Ho*Wo, 9*C), tap-major cols
        c = a.shape[-1]
        taps = [a[:, kh:kh + 2 * ho:2, kw:kw + 2 * wo:2, :]
                for kh in range(3) for kw in range(3)]
        cols = jnp.stack(taps, axis=3)      # (N, Ho, Wo, 9, C)
        return cols.reshape(m, 9 * c)

    x_cols = im2col(x_p).astype(jnp.float32)                       # (M, 9*Cx)
    t_cols = im2col(t_p).astype(jnp.float32)                       # (M, 9*Ct)

    # Gate-expansion weight: Wexp[k*Ct + c', k*Cx + j] = a1_w[c']  (else 0)
    wa = params['a1_w'].reshape(ct).astype(jnp.float32)
    wexp = jnp.eye(9, dtype=jnp.float32)[:, None, :, None] * wa[None, :, None, None]
    wexp = jnp.broadcast_to(wexp, (9, ct, 9, cx)).reshape(9 * ct, 9 * cx)
    c_arr = (1.0 + params['a1_b']).reshape(1).astype(jnp.float32)

    # 3x3 conv weights -> (9*Cx, Cout) -> zero-pad Cout -> bf16
    wk = jnp.transpose(params['conv_w'], (2, 3, 1, 0)).reshape(9 * cx, cout)
    wk = jnp.pad(wk, ((0, 0), (0, cp - cout))).astype(jnp.bfloat16)

    # Folded BatchNorm (eval mode) affine, padded channels -> identity-zero.
    eps = 1e-5
    scale_v = params['bn_gamma'] / jnp.sqrt(params['bn_var'] + eps)
    shift_v = params['bn_beta'] - params['bn_mean'] * scale_v
    scale = jnp.pad(scale_v, (0, cp - cout)).reshape(1, cp).astype(jnp.float32)
    shift = jnp.pad(shift_v, (0, cp - cout)).reshape(1, cp).astype(jnp.float32)

    out2d = pl.pallas_call(
        _agu_kernel,
        out_shape=jax.ShapeDtypeStruct((m, cp), jnp.float32),
        grid_spec=pltpu.PrefetchScalarGridSpec(
            num_scalar_prefetch=0,
            grid=(1,),
            in_specs=[
                pl.BlockSpec((m, 9 * cx), lambda i: (0, 0)),
                pl.BlockSpec((m, 9 * ct), lambda i: (0, 0)),
                pl.BlockSpec((9 * ct, 9 * cx), lambda i: (0, 0)),
                pl.BlockSpec(memory_space=pltpu.MemorySpace.SMEM),
                pl.BlockSpec((9 * cx, cp), lambda i: (0, 0)),
                pl.BlockSpec((1, cp), lambda i: (0, 0)),
                pl.BlockSpec((1, cp), lambda i: (0, 0)),
            ],
            out_specs=pl.BlockSpec((m, cp), lambda i: (0, 0)),
        ),
        compiler_params=pltpu.CompilerParams(
            dimension_semantics=("arbitrary",)),
    )(x_cols, t_cols, wexp, c_arr, wk, scale, shift)

    out = out2d[:, :cout].reshape(n, ho, wo, cout)
    return jnp.transpose(out, (0, 3, 1, 2))                        # back to NCHW


# --------------------------------------------------------------------------- #
# Pure-JAX reference (NCHW, mirrors the PyTorch forward)
# --------------------------------------------------------------------------- #
def agu_reference(x_nchw, t_nchw, params):
    t_up = bilinear_resize_nchw(t_nchw, x_nchw.shape[2], x_nchw.shape[3])
    gate = jnp.einsum('nchw,c->nhw', t_up, params['a1_w'].reshape(-1)) + params['a1_b'][0]
    wmap = x_nchw * (1.0 + gate)[:, None, :, :]
    conv = lax.conv_general_dilated(
        wmap, params['conv_w'], window_strides=(2, 2),
        padding=((1, 1), (1, 1)),
        dimension_numbers=('NCHW', 'OIHW', 'NCHW'))
    eps = 1e-5
    scale = params['bn_gamma'] / jnp.sqrt(params['bn_var'] + eps)
    shift = params['bn_beta'] - params['bn_mean'] * scale
    y = conv * scale[None, :, None, None] + shift[None, :, None, None]
    return jnp.maximum(y, 0.0)


if __name__ == "__main__":
    key = jax.random.PRNGKey(0)
    N, Cx, Ct, H, W, Ht, Wt, Cout = 2, 32, 16, 16, 16, 8, 8, 192
    ks = jax.random.split(key, 9)
    x = jax.random.normal(ks[0], (N, Cx, H, W), jnp.float32)
    t = jax.random.normal(ks[1], (N, Ct, Ht, Wt), jnp.float32)

    params = dict(
        a1_w=0.1 * jax.random.normal(ks[2], (1, Ct, 1, 1), jnp.float32),   # conv_a1.weight
        a1_b=0.1 * jax.random.normal(ks[3], (1,), jnp.float32),            # conv_a1.bias
        conv_w=0.05 * jax.random.normal(ks[4], (Cout, Cx, 3, 3), jnp.float32),
        bn_gamma=1.0 + 0.1 * jax.random.normal(ks[5], (Cout,), jnp.float32),
        bn_beta=0.1 * jax.random.normal(ks[6], (Cout,), jnp.float32),
        bn_mean=0.1 * jax.random.normal(ks[7], (Cout,), jnp.float32),
        bn_var=jax.random.uniform(ks[8], (Cout,), jnp.float32, 0.5, 1.5),
    )

    out = jax.block_until_ready(agu_forward(x, t, params))
    ref = jax.block_until_ready(agu_reference(x, t, params))

    assert out.shape == (N, Cout, (H - 1) // 2 + 1, (W - 1) // 2 + 1)
    # Tolerance reflects the bf16 MXU matmul (f32 accumulation) used in-kernel.
    np.testing.assert_allclose(np.asarray(out), np.asarray(ref), atol=2e-2, rtol=2e-2)
    print("KERNEL_OK")
</pallas_src>

<mosaic_0001>
module attributes {stable_mosaic.version = 11 : i64} {
  func.func @_agu_kernel(%arg0: i32, %arg1: memref<128x288xf32, #tpu.memory_space<vmem>>, %arg2: memref<128x144xf32, #tpu.memory_space<vmem>>, %arg3: memref<144x288xf32, #tpu.memory_space<vmem>>, %arg4: memref<1xf32, #tpu.memory_space<smem>>, %arg5: memref<288x256xbf16, #tpu.memory_space<vmem>>, %arg6: memref<1x256xf32, #tpu.memory_space<vmem>>, %arg7: memref<1x256xf32, #tpu.memory_space<vmem>>, %arg8: memref<128x256xf32, #tpu.memory_space<vmem>>) attributes {dimension_semantics = [#tpu.dimension_semantics<arbitrary>], iteration_bounds = array<i64: 1>, scalar_prefetch = 0 : i64, scratch_operands = 0 : i64, tpu.core_type = #tpu.core_type<tc>, window_params = [{pipeline_mode = #tpu.pipeline_mode<synchronous>, transform_indices = @transform_0, window_bounds = array<i64: 128, 288>}, {pipeline_mode = #tpu.pipeline_mode<synchronous>, transform_indices = @transform_1, window_bounds = array<i64: 128, 144>}, {pipeline_mode = #tpu.pipeline_mode<synchronous>, transform_indices = @transform_2, window_bounds = array<i64: 144, 288>}, {transform_indices = @transform_3, window_bounds = array<i64: 1>}, {pipeline_mode = #tpu.pipeline_mode<synchronous>, transform_indices = @transform_4, window_bounds = array<i64: 288, 256>}, {pipeline_mode = #tpu.pipeline_mode<synchronous>, transform_indices = @transform_5, window_bounds = array<i64: 1, 256>}, {pipeline_mode = #tpu.pipeline_mode<synchronous>, transform_indices = @transform_6, window_bounds = array<i64: 1, 256>}, {pipeline_mode = #tpu.pipeline_mode<synchronous>, transform_indices = @transform_7, window_bounds = array<i64: 128, 256>}]} {
    %c0 = arith.constant 0 : index
    %c0_0 = arith.constant 0 : index
    %0 = vector.load %arg2[%c0, %c0_0] : memref<128x144xf32, #tpu.memory_space<vmem>>, vector<128x144xf32>
    %c0_1 = arith.constant 0 : index
    %c0_2 = arith.constant 0 : index
    %1 = vector.load %arg3[%c0_1, %c0_2] : memref<144x288xf32, #tpu.memory_space<vmem>>, vector<144x288xf32>
    %cst = arith.constant dense<0.000000e+00> : vector<128x288xf32>
    %2 = tpu.matmul %0, %1, %cst {dimension_numbers = #tpu.dot_dimension_numbers<[1], [0], [0], [1], [0, 0, 1, 1], [], []>} : vector<128x144xf32>, vector<144x288xf32>, vector<128x288xf32> -> vector<128x288xf32>
    %c0_3 = arith.constant 0 : index
    %3 = memref.load %arg4[%c0_3] : memref<1xf32, #tpu.memory_space<smem>>
    %4 = vector.broadcast %3 : f32 to vector<128x288xf32>
    %5 = arith.addf %2, %4 : vector<128x288xf32>
    %c0_4 = arith.constant 0 : index
    %c0_5 = arith.constant 0 : index
    %6 = vector.load %arg1[%c0_4, %c0_5] : memref<128x288xf32, #tpu.memory_space<vmem>>, vector<128x288xf32>
    %7 = arith.mulf %6, %5 : vector<128x288xf32>
    %8 = arith.truncf %7 : vector<128x288xf32> to vector<128x288xbf16>
    %c0_6 = arith.constant 0 : index
    %c0_7 = arith.constant 0 : index
    %9 = vector.load %arg5[%c0_6, %c0_7] : memref<288x256xbf16, #tpu.memory_space<vmem>>, vector<288x256xbf16>
    %cst_8 = arith.constant dense<0.000000e+00> : vector<128x256xf32>
    %10 = tpu.matmul %8, %9, %cst_8 {dimension_numbers = #tpu.dot_dimension_numbers<[1], [0], [0], [1], [0, 0, 1, 1], [], []>} : vector<128x288xbf16>, vector<288x256xbf16>, vector<128x256xf32> -> vector<128x256xf32>
    %c0_9 = arith.constant 0 : index
    %c0_10 = arith.constant 0 : index
    %11 = vector.load %arg6[%c0_9, %c0_10] : memref<1x256xf32, #tpu.memory_space<vmem>>, vector<1x256xf32>
    %12 = vector.broadcast %11 : vector<1x256xf32> to vector<128x256xf32>
    %13 = arith.mulf %10, %12 : vector<128x256xf32>
    %c0_11 = arith.constant 0 : index
    %c0_12 = arith.constant 0 : index
    %14 = vector.load %arg7[%c0_11, %c0_12] : memref<1x256xf32, #tpu.memory_space<vmem>>, vector<1x256xf32>
    %15 = vector.broadcast %14 : vector<1x256xf32> to vector<128x256xf32>
    %16 = arith.addf %13, %15 : vector<128x256xf32>
    %cst_13 = arith.constant 0.000000e+00 : f32
    %17 = vector.broadcast %cst_13 : f32 to vector<128x256xf32>
    %18 = arith.maximumf %16, %17 : vector<128x256xf32>
    %c0_14 = arith.constant 0 : index
    %c0_15 = arith.constant 0 : index
    %19 = vector.load %arg8[%c0_14, %c0_15] : memref<128x256xf32, #tpu.memory_space<vmem>>, vector<128x256xf32>
    tpu.vector_store %arg8[%c0_14, %c0_15], %18 {strides = array<i32>} : memref<128x256xf32, #tpu.memory_space<vmem>>, vector<128x256xf32>,
    return
  }
  func.func @transform_0(%arg0: i32) -> (i32, i32) {
    %c0_i32 = arith.constant 0 : i32
    %c0_i32_0 = arith.constant 0 : i32
    %c0_i32_1 = arith.constant 0 : i32
    return %c0_i32, %c0_i32_0 : i32, i32
  }
  func.func @transform_1(%arg0: i32) -> (i32, i32) {
    %c0_i32 = arith.constant 0 : i32
    %c0_i32_0 = arith.constant 0 : i32
    %c0_i32_1 = arith.constant 0 : i32
    return %c0_i32, %c0_i32_0 : i32, i32
  }
  func.func @transform_2(%arg0: i32) -> (i32, i32) {
    %c0_i32 = arith.constant 0 : i32
    %c0_i32_0 = arith.constant 0 : i32
    %c0_i32_1 = arith.constant 0 : i32
    return %c0_i32, %c0_i32_0 : i32, i32
  }
  func.func @transform_3(%arg0: i32) -> i32 {
    %c0_i32 = arith.constant 0 : i32
    %c0_i32_0 = arith.constant 0 : i32
    return %c0_i32 : i32
  }
  func.func @transform_4(%arg0: i32) -> (i32, i32) {
    %c0_i32 = arith.constant 0 : i32
    %c0_i32_0 = arith.constant 0 : i32
    %c0_i32_1 = arith.constant 0 : i32
    return %c0_i32, %c0_i32_0 : i32, i32
  }
  func.func @transform_5(%arg0: i32) -> (i32, i32) {
    %c0_i32 = arith.constant 0 : i32
    %c0_i32_0 = arith.constant 0 : i32
    %c0_i32_1 = arith.constant 0 : i32
    return %c0_i32, %c0_i32_0 : i32, i32
  }
  func.func @transform_6(%arg0: i32) -> (i32, i32) {
    %c0_i32 = arith.constant 0 : i32
    %c0_i32_0 = arith.constant 0 : i32
    %c0_i32_1 = arith.constant 0 : i32
    return %c0_i32, %c0_i32_0 : i32, i32
  }
  func.func @transform_7(%arg0: i32) -> (i32, i32) {
    %c0_i32 = arith.constant 0 : i32
    %c0_i32_0 = arith.constant 0 : i32
    %c0_i32_1 = arith.constant 0 : i32
    return %c0_i32, %c0_i32_0 : i32, i32
  }
}

</mosaic_0001>

<bundles_post_ra>
// kernel: tpu_custom_call.1
= control target key start
LH: loop header
LB: loop body
LE: loop exit
PB: predicated region body
PF: predicated region fallthrough
CT: control target
= control target key end

     0   :  { %v1481_v3 = vmov 0.0|0.0   ;;  %vm117_vm0 = vcmask 130048   ;;  %s2236_s0 = inlined_call_operand.vmem [shape: f32[128,288], index: 0, kind: input, shape index: {}]   ;;  %s2237_s1 = inlined_call_operand.vmem [shape: f32[128,144], index: 1, kind: input, shape index: {}]   ;;  %s2238_s2 = inlined_call_operand.vmem [shape: f32[144,288], index: 2, kind: input, shape index: {}]   ;;  %s2239_s3 = inlined_call_operand.<no memory space> [shape: f32[1], index: 3, kind: input, shape index: {}]   ;;  %s2240_s4 = inlined_call_operand.vmem [shape: bf16[288,256], index: 4, kind: input, shape index: {}]   ;;  %s2241_s5 = inlined_call_operand.vmem [shape: f32[1,256], index: 5, kind: input, shape index: {}]   ;;  %s2242_s6 = inlined_call_operand.vmem [shape: f32[1,256], index: 6, kind: input, shape index: {}]   ;;  %s2243_s7 = inlined_call_operand.hbm [shape: f32[128,256], index: 7, kind: output, shape index: {}]  }
   0x1   :  { %v62_v0 = vld [vmem:[%s2238_s2 + $0x8] sm:$0xff]  ;;  %v65_v1 = vld [vmem:[%s2238_s2 + $0x20] sm:$0xff]  ;;  %v63_v2 = vld [vmem:[%s2238_s2 + $0x10] sm:$0xff]  ;;  %1339 = vmatprep.subr.bf16.mxu1 %v1481_v3 }
   0x2   :  { %v1303_v4 = vpack.c.bf16 %v65_v1, %v62_v0  ;;  %v66_v5 = vld [vmem:[%s2238_s2 + $0x28] sm:$0xff]  ;;  %v61_v6 = vld [vmem:[%s2238_s2] sm:$0xff]  ;;  %v64_v7 = vld [vmem:[%s2238_s2 + $0x18] sm:$0xff] }
   0x3   :  { %v1340_v8 = vpack.c.bf16 %v66_v5, %v63_v2  ;;  %v1305_v9 = vpack.c.bf16 %v64_v7, %v61_v6  ;;  %v68_v10 = vld [vmem:[%s2238_s2 + $0x38] sm:$0xff]  ;;  %v71_v11 = vld [vmem:[%s2238_s2 + $0x50] sm:$0xff]  ;;  %v69_v12 = vld [vmem:[%s2238_s2 + $0x40] sm:$0xff] }
   0x4   :  { %1304 = vmatprep.subr.bf16.mxu0 %v1303_v4  ;;  %v1307_v13 = vpack.c.bf16 %v71_v11, %v68_v10  ;;  %v72_v14 = vld [vmem:[%s2238_s2 + $0x58] sm:$0xff]  ;;  %v67_v15 = vld [vmem:[%s2238_s2 + $0x30] sm:$0xff]  ;;  %v70_v16 = vld [vmem:[%s2238_s2 + $0x48] sm:$0xff] }
   0x5   :  { %1341 = vmatpush1.bf16.msra.mxu1 %v1340_v8  ;;  %1306 = vmatpush1.bf16.msra.mxu0 %v1305_v9  ;;  %v1343_v17 = vpack.c.bf16 %v72_v14, %v69_v12  ;;  %v1309_v18 = vpack.c.bf16 %v70_v16, %v67_v15  ;;  %v74_v19 = vld [vmem:[%s2238_s2 + $0x68] sm:$0xff]  ;;  %v77_v20 = vld [vmem:[%s2238_s2 + $0x80] sm:$0xff]  ;;  %v75_v21 = vld [vmem:[%s2238_s2 + $0x70] sm:$0xff] }
   0x6   :  { %1342 = vmatprep.subr.bf16.mxu1 %v1481_v3  ;;  %1308 = vmatprep.subr.bf16.mxu0 %v1307_v13  ;;  %v1311_v22 = vpack.c.bf16 %v77_v20, %v74_v19  ;;  %v78_v23 = vld [vmem:[%s2238_s2 + $0x88] sm:$0xff]  ;;  %v73_v24 = vld [vmem:[%s2238_s2 + $0x60] sm:$0xff]  ;;  %v76_v25 = vld [vmem:[%s2238_s2 + $0x78] sm:$0xff] }
   0x7   :  { %v80_v26 = vld [vmem:[%s2238_s2 + $0x98] sm:$0xff]  ;;  %v83_v27 = vld [vmem:[%s2238_s2 + $0xb0] sm:$0xff]  ;;  %v1346_v28 = vpack.c.bf16 %v78_v23, %v75_v21  ;;  %v1313_v29 = vpack.c.bf16 %v76_v25, %v73_v24  ;;  %v81_v30 = vld [vmem:[%s2238_s2 + $0xa0] sm:$0xff] }
   0x8   :  { %v1315_v31 = vpack.c.bf16 %v83_v27, %v80_v26  ;;  %v84_v32 = vld [vmem:[%s2238_s2 + $0xb8] sm:$0xff]  ;;  %v79_v33 = vld [vmem:[%s2238_s2 + $0x90] sm:$0xff]  ;;  %v82_v34 = vld [vmem:[%s2238_s2 + $0xa8] sm:$0xff] }
   0x9   :  { %1344 = vmatpush1.bf16.msra.mxu1 %v1343_v17  ;;  %1310 = vmatpush1.bf16.msra.mxu0 %v1309_v18  ;;  %v86_v35 = vld [vmem:[%s2238_s2 + $0xc8] sm:$0xff]  ;;  %v89_v36 = vld [vmem:[%s2238_s2 + $0xe0] sm:$0xff]  ;;  %v1349_v37 = vpack.c.bf16 %v84_v32, %v81_v30  ;;  %v1317_v38 = vpack.c.bf16 %v82_v34, %v79_v33  ;;  %v87_v39 = vld [vmem:[%s2238_s2 + $0xd0] sm:$0xff] }
   0xa   :  { %1345 = vmatprep.subr.bf16.mxu1 %v1481_v3  ;;  %1312 = vmatprep.subr.bf16.mxu0 %v1311_v22  ;;  %v1319_v40 = vpack.c.bf16 %v89_v36, %v86_v35  ;;  %v90_v41 = vld [vmem:[%s2238_s2 + $0xe8] sm:$0xff]  ;;  %v85_v42 = vld [vmem:[%s2238_s2 + $0xc0] sm:$0xff]  ;;  %v88_v43 = vld [vmem:[%s2238_s2 + $0xd8] sm:$0xff] }
   0xb   :  { %v92_v44 = vld [vmem:[%s2238_s2 + $0xf8] sm:$0xff]  ;;  %v95_v45 = vld [vmem:[%s2238_s2 + $0x110] sm:$0xff]  ;;  %v1352_v46 = vpack.c.bf16 %v90_v41, %v87_v39  ;;  %v1321_v47 = vpack.c.bf16 %v88_v43, %v85_v42  ;;  %v93_v48 = vld [vmem:[%s2238_s2 + $0x100] sm:$0xff] }
   0xc   :  { %v1323_v49 = vpack.c.bf16 %v95_v45, %v92_v44  ;;  %v96_v50 = vld [vmem:[%s2238_s2 + $0x118] sm:$0xff]  ;;  %v91_v51 = vld [vmem:[%s2238_s2 + $0xf0] sm:$0xff]  ;;  %v94_v52 = vld [vmem:[%s2238_s2 + $0x108] sm:$0xff] }
   0xd   :  { %1347 = vmatpush1.bf16.msra.mxu1 %v1346_v28  ;;  %1314 = vmatpush1.bf16.msra.mxu0 %v1313_v29  ;;  %v98_v53 = vld [vmem:[%s2238_s2 + $0x128] sm:$0xff]  ;;  %v101_v54 = vld [vmem:[%s2238_s2 + $0x140] sm:$0xff]  ;;  %v1355_v56 = vpack.c.bf16 %v96_v50, %v93_v48  ;;  %v1325_v57 = vpack.c.bf16 %v94_v52, %v91_v51  ;;  %v99_v58 = vld [vmem:[%s2238_s2 + $0x130] sm:$0xff] }
   0xe   :  { %1348 = vmatprep.subr.bf16.mxu1 %v1481_v3  ;;  %1316 = vmatprep.subr.bf16.mxu0 %v1315_v31  ;;  %v30_v55 = vld [vmem:[%s2237_s1 + $0x8] sm:$0xff]  ;;  %v1327_v59 = vpack.c.bf16 %v101_v54, %v98_v53  ;;  %v97_v61 = vld [vmem:[%s2238_s2 + $0x120] sm:$0xff]  ;;  %v100_v62 = vld [vmem:[%s2238_s2 + $0x138] sm:$0xff] }
   0xf   :  { %1243 = vmatprep.mubr.msk.f32.mxu1 %vm117_vm0, %v30_v55  ;;  %1227 = vmatprep.mubr.msk.f32.mxu0 %vm117_vm0, %v30_v55  ;;  %v102_v60 = vld [vmem:[%s2238_s2 + $0x148] sm:$0xff]  ;;  %v104_v63 = vld [vmem:[%s2238_s2 + $0x158] sm:$0xff]  ;;  %v107_v0 = vld [vmem:[%s2238_s2 + $0x170] sm:$0xff]  ;;  %v1329_v2 = vpack.c.bf16 %v100_v62, %v97_v61 }
  0x10   :  { %v1358_v1 = vpack.c.bf16 %v102_v60, %v99_v58  ;;  %v105_v4 = vld [vmem:[%s2238_s2 + $0x160] sm:$0xff]  ;;  %v1331_v5 = vpack.c.bf16 %v107_v0, %v104_v63  ;;  %v108_v6 = vld [vmem:[%s2238_s2 + $0x178] sm:$0xff]  ;;  %v103_v7 = vld [vmem:[%s2238_s2 + $0x150] sm:$0xff] }
  0x11   :  { %1350 = vmatpush1.bf16.msra.mxu1 %v1349_v37  ;;  %1318 = vmatpush1.bf16.msra.mxu0 %v1317_v38  ;;  %v106_v8 = vld [vmem:[%s2238_s2 + $0x168] sm:$0xff]  ;;  %v113_v10 = vld [vmem:[%s2238_s2 + $0x1a0] sm:$0xff]  ;;  %v1361_v11 = vpack.c.bf16 %v108_v6, %v105_v4  ;;  %v111_v13 = vld [vmem:[%s2238_s2 + $0x190] sm:$0xff] }
  0x12   :  { %1351 = vmatprep.subr.bf16.mxu1 %v1481_v3  ;;  %1320 = vmatprep.subr.bf16.mxu0 %v1319_v40  ;;  %v110_v9 = vld [vmem:[%s2238_s2 + $0x188] sm:$0xff]  ;;  %v1333_v12 = vpack.c.bf16 %v106_v8, %v103_v7  ;;  %v109_v16 = vld [vmem:[%s2238_s2 + $0x180] sm:$0xff]  ;;  %v112_v17 = vld [vmem:[%s2238_s2 + $0x198] sm:$0xff] }
  0x13   :  { %v114_v14 = vld [vmem:[%s2238_s2 + $0x1a8] sm:$0xff]  ;;  %v1335_v15 = vpack.c.bf16 %v113_v10, %v110_v9  ;;  %v1337_v19 = vpack.c.bf16 %v112_v17, %v109_v16  ;;  %v29_v22 = vld [vmem:[%s2237_s1] sm:$0xff]  ;;  %v32_v23 = vld [vmem:[%s2237_s1 + $0x18] sm:$0xff] }
  0x14   :  { %v1364_v18 = vpack.c.bf16 %v114_v14, %v111_v13  ;;  %v1405_v20 = vld [vmem:[%s2240_s4 + $0x4] ss:$8 sps:$4 sm:$0xff]   ;;  %v1406_v24 = vld [vmem:[%s2240_s4 + $0x100] ss:$8 sps:$4 sm:$0xff]   ;;  %v1411_v25 = vld [vmem:[%s2240_s4 + $0x14] ss:$8 sps:$4 sm:$0xff]  }
  0x15   :  { %1353 = vmatpush1.bf16.msra.mxu1 %v1352_v46  ;;  %1322 = vmatpush1.bf16.msra.mxu0 %v1321_v47  ;;  %v1408_v21 = vld [vmem:[%s2240_s4 + $0x104] ss:$8 sps:$4 sm:$0xff]   ;;  %v31_v26 = vld [vmem:[%s2237_s1 + $0x10] sm:$0xff]  ;;  %v36_v33 = vld [vmem:[%s2237_s1 + $0x38] sm:$0xff] }
  0x16   :  { %1354 = vmatprep.subr.bf16.mxu1 %v1481_v3  ;;  %1324 = vmatprep.subr.bf16.mxu0 %v1323_v49  ;;  %v34_v27 = vld [vmem:[%s2237_s1 + $0x28] sm:$0xff]  ;;  %v1409_v28 = vld [vmem:[%s2240_s4 + $0x10] ss:$8 sps:$4 sm:$0xff]   ;;  %v1435_v31 = vld [vmem:[%s2240_s4 + $0x114] ss:$8 sps:$4 sm:$0xff]  }
  0x17   :  { %v1414_v29 = vld [vmem:[%s2240_s4 + $0x24] ss:$8 sps:$4 sm:$0xff]   ;;  %v1433_v30 = vld [vmem:[%s2240_s4 + $0x110] ss:$8 sps:$4 sm:$0xff]   ;;  %v1412_v34 = vld [vmem:[%s2240_s4 + $0x20] ss:$8 sps:$4 sm:$0xff]  }
  0x18   :  { %v33_v32 = vld [vmem:[%s2237_s1 + $0x20] sm:$0xff]  ;;  %v35_v35 = vld [vmem:[%s2237_s1 + $0x30] sm:$0xff]  ;;  %v38_v37 = vld [vmem:[%s2237_s1 + $0x48] sm:$0xff] }
  0x19   :  { %1356 = vmatpush1.bf16.msra.mxu1 %v1355_v56  ;;  %1326 = vmatpush1.bf16.msra.mxu0 %v1325_v57  ;;  %v1417_v36 = vld [vmem:[%s2240_s4 + $0x34] ss:$8 sps:$4 sm:$0xff]   ;;  %v1415_v38 = vld [vmem:[%s2240_s4 + $0x30] ss:$8 sps:$4 sm:$0xff]   ;;  %v1420_v39 = vld [vmem:[%s2240_s4 + $0x44] ss:$8 sps:$4 sm:$0xff]  }
  0x1a   :  { %1357 = vmatprep.subr.bf16.mxu1 %v1481_v3  ;;  %1328 = vmatprep.subr.bf16.mxu0 %v1327_v59 }
  0x1d   :  { %1359 = vmatpush1.bf16.msra.mxu1 %v1358_v1  ;;  %1330 = vmatpush1.bf16.msra.mxu0 %v1329_v2 }
  0x1e   :  { %1360 = vmatprep.subr.bf16.mxu1 %v1481_v3  ;;  %1332 = vmatprep.subr.bf16.mxu0 %v1331_v5 }
  0x21   :  { %1362 = vmatpush1.bf16.msra.mxu1 %v1361_v11  ;;  %1334 = vmatpush1.bf16.msra.mxu0 %v1333_v12 }
  0x22   :  { %1363 = vmatprep.subr.bf16.mxu1 %v1481_v3  ;;  %1336 = vmatprep.subr.bf16.mxu0 %v1335_v15  ;;  %v1403_v3 = vld [vmem:[%s2240_s4] ss:$8 sps:$4 sm:$0xff]  }
  0x25   :  { %1365 = vmatpush1.bf16.msra.mxu1 %v1364_v18  ;;  %1338 = vmatpush1.bf16.msra.mxu0 %v1337_v19 }
  0x26   :  { %833 = vmatprep.subr.bf16.mxu1 %v1405_v20  ;;  %946 = vmatprep.subr.bf16.mxu0 %v1408_v21 }
  0x28   :  { %392 = vmatmul.mubr.f32.vlgmr.msra.gmra.mrb[0].mxu1 %v29_v22  ;;  %231 = vmatmul.mubr.f32.vlgmr.msra.gmra.mrb[0].mxu0 %v29_v22 }
  0x29   :  { %1244 = vmatprep.mubr.msk.f32.mxu1 %vm117_vm0, %v32_v23  ;;  %1228 = vmatprep.mubr.msk.f32.mxu0 %vm117_vm0, %v32_v23 }
  0x2a   :  { %834 = vmatpush1.bf16.msra.mxu1 %v1403_v3  ;;  %947 = vmatpush1.bf16.msra.mxu0 %v1406_v24 }
  0x2b   :  { %835 = vmatprep.subr.bf16.mxu1 %v1411_v25  ;;  %948 = vmatprep.subr.bf16.mxu0 %v1435_v31 }
  0x2c   :  { %397 = vmatmul.mubr.f32.gmra.mrb[2].mxu1 %v31_v26  ;;  %237 = vmatmul.mubr.f32.gmra.mrb[2].mxu0 %v31_v26 }
  0x2d   :  { %1245 = vmatprep.mubr.msk.f32.mxu1 %vm117_vm0, %v34_v27  ;;  %1229 = vmatprep.mubr.msk.f32.mxu0 %vm117_vm0, %v34_v27 }
  0x2e   :  { %836 = vmatpush1.bf16.msra.mxu1 %v1409_v28  ;;  %949 = vmatpush1.bf16.msra.mxu0 %v1433_v30 }
  0x2f   :  { %837 = vmatprep.subr.bf16.mxu1 %v1414_v29 }
  0x30   :  { %402 = vmatmul.mubr.f32.gmra.mrb[4].mxu1 %v33_v32  ;;  %243 = vmatmul.mubr.f32.gmra.mrb[4].mxu0 %v33_v32 }
  0x31   :  { %1246 = vmatprep.mubr.msk.f32.mxu1 %vm117_vm0, %v36_v33  ;;  %1230 = vmatprep.mubr.msk.f32.mxu0 %vm117_vm0, %v36_v33 }
  0x32   :  { %838 = vmatpush1.bf16.msra.mxu1 %v1412_v34 }
  0x33   :  { %839 = vmatprep.subr.bf16.mxu1 %v1417_v36 }
  0x34   :  { %13 = vsyncpa [#allocation4], 0  ;;  %407 = vmatmul.mubr.f32.gmra.mrb[6].mxu1 %v35_v35  ;;  %249 = vmatmul.mubr.f32.gmra.mrb[6].mxu0 %v35_v35  ;;  %v37_v40 = vld [vmem:[%s2237_s1 + $0x40] sm:$0xff]  ;;  %v40_v41 = vld [vmem:[%s2237_s1 + $0x58] sm:$0xff]  ;;  %v1482_v23 = vmov 0   ;;  %v1937_v3 = vstv %s2239_s3  ;;  %vm808_vm1 = vcmask 261120  }
  0x35   :  { %1247 = vmatprep.mubr.msk.f32.mxu1 %vm117_vm0, %v38_v37  ;;  %1231 = vmatprep.mubr.msk.f32.mxu0 %vm117_vm0, %v38_v37  ;;  %v1418_v42 = vld [vmem:[%s2240_s4 + $0x40] ss:$8 sps:$4 sm:$0xff]   ;;  %v1423_v43 = vld [vmem:[%s2240_s4 + $0x54] ss:$8 sps:$4 sm:$0xff]   ;;  %v1421_v46 = vld [vmem:[%s2240_s4 + $0x50] ss:$8 sps:$4 sm:$0xff]  }
  0x36   :  { %840 = vmatpush1.bf16.msra.mxu1 %v1415_v38  ;;  %v39_v44 = vld [vmem:[%s2237_s1 + $0x50] sm:$0xff]  ;;  %v42_v45 = vld [vmem:[%s2237_s1 + $0x68] sm:$0xff]  ;;  %v41_v48 = vld [vmem:[%s2237_s1 + $0x60] sm:$0xff] }
  0x37   :  { %841 = vmatprep.subr.bf16.mxu1 %v1420_v39  ;;  %v1426_v47 = vld [vmem:[%s2240_s4 + $0x64] ss:$8 sps:$4 sm:$0xff]   ;;  %v44_v49 = vld [vmem:[%s2237_s1 + $0x78] sm:$0xff]  ;;  %v1424_v50 = vld [vmem:[%s2240_s4 + $0x60] ss:$8 sps:$4 sm:$0xff]  }
  0x38   :  { %412 = vmatmul.mubr.f32.gmra.mrb[8].mxu1 %v37_v40  ;;  %255 = vmatmul.mubr.f32.gmra.mrb[8].mxu0 %v37_v40  ;;  %v1429_v51 = vld [vmem:[%s2240_s4 + $0x74] ss:$8 sps:$4 sm:$0xff]   ;;  %v46_v53 = vld [vmem:[%s2237_s1 + $0x88] sm:$0xff]  ;;  %v1427_v54 = vld [vmem:[%s2240_s4 + $0x70] ss:$8 sps:$4 sm:$0xff]  }
  0x39   :  { %1248 = vmatprep.mubr.msk.f32.mxu1 %vm117_vm0, %v40_v41  ;;  %1232 = vmatprep.mubr.msk.f32.mxu0 %vm117_vm0, %v40_v41  ;;  %v43_v52 = vld [vmem:[%s2237_s1 + $0x70] sm:$0xff]  ;;  %v1432_v55 = vld [vmem:[%s2240_s4 + $0x84] ss:$8 sps:$4 sm:$0xff]   ;;  %v48_v57 = vld [vmem:[%s2237_s1 + $0x98] sm:$0xff] }
  0x3a   :  { %842 = vmatpush1.bf16.msra.mxu1 %v1418_v42  ;;  %v45_v56 = vld [vmem:[%s2237_s1 + $0x80] sm:$0xff]  ;;  %v1438_v59 = vld [vmem:[%s2240_s4 + $0x94] ss:$8 sps:$4 sm:$0xff]   ;;  %v50_v61 = vld [vmem:[%s2237_s1 + $0xa8] sm:$0xff] }
  0x3b   :  { %843 = vmatprep.subr.bf16.mxu1 %v1423_v43  ;;  %v1430_v58 = vld [vmem:[%s2240_s4 + $0x80] ss:$8 sps:$4 sm:$0xff]   ;;  %v47_v60 = vld [vmem:[%s2237_s1 + $0x90] sm:$0xff]  ;;  %v1441_v63 = vld [vmem:[%s2240_s4 + $0xa4] ss:$8 sps:$4 sm:$0xff]  }
  0x3c   :  { %417 = vmatmul.mubr.f32.gmra.mrb[10].mxu1 %v39_v44  ;;  %261 = vmatmul.mubr.f32.gmra.mrb[10].mxu0 %v39_v44  ;;  %v1436_v62 = vld [vmem:[%s2240_s4 + $0x90] ss:$8 sps:$4 sm:$0xff]   ;;  %v49_v0 = vld [vmem:[%s2237_s1 + $0xa0] sm:$0xff]  ;;  %v1444_v4 = vld [vmem:[%s2240_s4 + $0xb4] ss:$8 sps:$4 sm:$0xff]  }
  0x3d   :  { %1249 = vmatprep.mubr.msk.f32.mxu1 %vm117_vm0, %v42_v45  ;;  %1233 = vmatprep.mubr.msk.f32.mxu0 %vm117_vm0, %v42_v45  ;;  %v52_v1 = vld [vmem:[%s2237_s1 + $0xb8] sm:$0xff]  ;;  %v1439_v2 = vld [vmem:[%s2240_s4 + $0xa0] ss:$8 sps:$4 sm:$0xff]   ;;  %v51_v5 = vld [vmem:[%s2237_s1 + $0xb0] sm:$0xff] }
  0x3e   :  { %844 = vmatpush1.bf16.msra.mxu1 %v1421_v46  ;;  %v54_v6 = vld [vmem:[%s2237_s1 + $0xc8] sm:$0xff]  ;;  %v1442_v7 = vld [vmem:[%s2240_s4 + $0xb0] ss:$8 sps:$4 sm:$0xff]   ;;  %v53_v9 = vld [vmem:[%s2237_s1 + $0xc0] sm:$0xff] }
  0x3f   :  { %845 = vmatprep.subr.bf16.mxu1 %v1426_v47  ;;  %v1447_v8 = vld [vmem:[%s2240_s4 + $0xc4] ss:$8 sps:$4 sm:$0xff]   ;;  %v56_v10 = vld [vmem:[%s2237_s1 + $0xd8] sm:$0xff]  ;;  %v1445_v11 = vld [vmem:[%s2240_s4 + $0xc0] ss:$8 sps:$4 sm:$0xff]  }
  0x40   :  { %422 = vmatmul.mubr.f32.gmra.mrb[12].mxu1 %v41_v48  ;;  %267 = vmatmul.mubr.f32.gmra.mrb[12].mxu0 %v41_v48  ;;  %v55_v12 = vld [vmem:[%s2237_s1 + $0xd0] sm:$0xff]  ;;  %v58_v13 = vld [vmem:[%s2237_s1 + $0xe8] sm:$0xff]  ;;  %v57_v14 = vld [vmem:[%s2237_s1 + $0xe0] sm:$0xff] }
  0x41   :  { %1250 = vmatprep.mubr.msk.f32.mxu1 %vm117_vm0, %v44_v49  ;;  %1234 = vmatprep.mubr.msk.f32.mxu0 %vm117_vm0, %v44_v49  ;;  %v60_v15 = vld [vmem:[%s2237_s1 + $0xf8] sm:$0xff]  ;;  %v59_v16 = vld [vmem:[%s2237_s1 + $0xf0] sm:$0xff]  ;;  %v1453_v19 = vld [vmem:[%s2240_s4 + $0xe4] ss:$8 sps:$4 sm:$0xff]  }
  0x42   :  { %846 = vmatpush1.bf16.msra.mxu1 %v1424_v50  ;;  %v1450_v17 = vld [vmem:[%s2240_s4 + $0xd4] ss:$8 sps:$4 sm:$0xff]   ;;  %v1448_v18 = vld [vmem:[%s2240_s4 + $0xd0] ss:$8 sps:$4 sm:$0xff]   ;;  %v1451_v20 = vld [vmem:[%s2240_s4 + $0xe0] ss:$8 sps:$4 sm:$0xff]  }
  0x43   :  { %847 = vmatprep.subr.bf16.mxu1 %v1429_v51  ;;  %v1456_v21 = vld [vmem:[%s2240_s4 + $0xf4] ss:$8 sps:$4 sm:$0xff]   ;;  %v1454_v22 = vld [vmem:[%s2240_s4 + $0xf0] ss:$8 sps:$4 sm:$0xff]   ;;  %v472_v31 = vld [vmem:[%s2236_s0] sm:$0xff] }
  0x44   :  { %427 = vmatmul.mubr.f32.gmra.mrb[14].mxu1 %v43_v52  ;;  %273 = vmatmul.mubr.f32.gmra.mrb[14].mxu0 %v43_v52  ;;  %v474_v29 = vld [vmem:[%s2236_s0 + $0x10] sm:$0xff]  ;;  %v477_v34 = vld [vmem:[%s2236_s0 + $0x28] sm:$0xff]  ;;  %v475_v36 = vld [vmem:[%s2236_s0 + $0x18] sm:$0xff] }
  0x45   :  { %1251 = vmatprep.mubr.msk.f32.mxu1 %vm117_vm0, %v46_v53  ;;  %1235 = vmatprep.mubr.msk.f32.mxu0 %vm117_vm0, %v46_v53  ;;  %v473_v37 = vld [vmem:[%s2236_s0 + $0x8] sm:$0xff]  ;;  %v476_v42 = vld [vmem:[%s2236_s0 + $0x20] sm:$0xff] }
  0x46   :  { %848 = vmatpush1.bf16.msra.mxu1 %v1427_v54 }
  0x47   :  { %849 = vmatprep.subr.bf16.mxu1 %v1432_v55 }
  0x48   :  { %432 = vmatmul.mubr.f32.gmra.mrb[16].mxu1 %v45_v56  ;;  %279 = vmatmul.mubr.f32.gmra.mrb[16].mxu0 %v45_v56 }
  0x49   :  { %1252 = vmatprep.mubr.msk.f32.mxu1 %vm117_vm0, %v48_v57  ;;  %1236 = vmatprep.mubr.msk.f32.mxu0 %vm117_vm0, %v48_v57  ;;  %v480_v57 = vld [vmem:[%s2236_s0 + $0x40] sm:$0xff] }
  0x4a   :  { %850 = vmatpush1.bf16.msra.mxu1 %v1430_v58 }
  0x4b   :  { %851 = vmatprep.subr.bf16.mxu1 %v1438_v59 }
  0x4c   :  { %437 = vmatmul.mubr.f32.gmra.mrb[18].mxu1 %v47_v60  ;;  %285 = vmatmul.mubr.f32.gmra.mrb[18].mxu0 %v47_v60  ;;  %v478_v60 = vld [vmem:[%s2236_s0 + $0x30] sm:$0xff] }
  0x4d   :  { %1253 = vmatprep.mubr.msk.f32.mxu1 %vm117_vm0, %v50_v61  ;;  %1237 = vmatprep.mubr.msk.f32.mxu0 %vm117_vm0, %v50_v61 }
  0x4e   :  { %852 = vmatpush1.bf16.msra.mxu1 %v1436_v62 }
  0x4f   :  { %853 = vmatprep.subr.bf16.mxu1 %v1441_v63  ;;  %v483_v63 = vld [vmem:[%s2236_s0 + $0x58] sm:$0xff] }
  0x50   :  { %442 = vmatmul.mubr.f32.gmra.mrb[20].mxu1 %v49_v0  ;;  %291 = vmatmul.mubr.f32.gmra.mrb[20].mxu0 %v49_v0 }
  0x51   :  { %1254 = vmatprep.mubr.msk.f32.mxu1 %vm117_vm0, %v52_v1  ;;  %1238 = vmatprep.mubr.msk.f32.mxu0 %vm117_vm0, %v52_v1  ;;  %v481_v1 = vld [vmem:[%s2236_s0 + $0x48] sm:$0xff] }
  0x52   :  { %854 = vmatpush1.bf16.msra.mxu1 %v1439_v2  ;;  %v479_v2 = vld [vmem:[%s2236_s0 + $0x38] sm:$0xff] }
  0x53   :  { %855 = vmatprep.subr.bf16.mxu1 %v1444_v4 }
  0x54   :  { %447 = vmatmul.mubr.f32.gmra.mrb[22].mxu1 %v51_v5  ;;  %297 = vmatmul.mubr.f32.gmra.mrb[22].mxu0 %v51_v5 }
  0x55   :  { %1255 = vmatprep.mubr.msk.f32.mxu1 %vm117_vm0, %v54_v6  ;;  %1239 = vmatprep.mubr.msk.f32.mxu0 %vm117_vm0, %v54_v6 }
  0x56   :  { %856 = vmatpush1.bf16.msra.mxu1 %v1442_v7 }
  0x57   :  { %857 = vmatprep.subr.bf16.mxu1 %v1447_v8  ;;  %v482_v8 = vld [vmem:[%s2236_s0 + $0x50] sm:$0xff] }
  0x58   :  { %452 = vmatmul.mubr.f32.gmra.mrb[24].mxu1 %v53_v9  ;;  %303 = vmatmul.mubr.f32.gmra.mrb[24].mxu0 %v53_v9 }
  0x59   :  { %1256 = vmatprep.mubr.msk.f32.mxu1 %vm117_vm0, %v56_v10  ;;  %1240 = vmatprep.mubr.msk.f32.mxu0 %vm117_vm0, %v56_v10 }
  0x5a   :  { %858 = vmatpush1.bf16.msra.mxu1 %v1445_v11 }
  0x5b   :  { %859 = vmatprep.subr.bf16.mxu1 %v1450_v17 }
  0x5c   :  { %457 = vmatmul.mubr.f32.gmra.mrb[26].mxu1 %v55_v12  ;;  %309 = vmatmul.mubr.f32.gmra.mrb[26].mxu0 %v55_v12 }
  0x5d   :  { %1257 = vmatprep.mubr.msk.f32.mxu1 %vm117_vm0, %v58_v13  ;;  %1241 = vmatprep.mubr.msk.f32.mxu0 %vm117_vm0, %v58_v13 }
  0x5e   :  { %860 = vmatpush1.bf16.msra.mxu1 %v1448_v18 }
  0x5f   :  { %861 = vmatprep.subr.bf16.mxu1 %v1453_v19 }
  0x60   :  { %462 = vmatmul.mubr.f32.gmra.mrb[28].mxu1 %v57_v14  ;;  %315 = vmatmul.mubr.f32.gmra.mrb[28].mxu0 %v57_v14 }
  0x61   :  { %1258 = vmatprep.mubr.msk.f32.mxu1 %vm117_vm0, %v60_v15  ;;  %1242 = vmatprep.mubr.msk.f32.mxu0 %vm117_vm0, %v60_v15 }
  0x62   :  { %862 = vmatpush1.bf16.msra.mxu1 %v1451_v20 }
  0x63   :  { %863 = vmatprep.subr.bf16.mxu1 %v1456_v21 }
  0x64   :  { %467 = vmatmul.mubr.f32.gmra.mrb[30].mxu1 %v59_v16  ;;  %321 = vmatmul.mubr.f32.gmra.mrb[30].mxu0 %v59_v16 }
  0x65   :  { %978 = vmatprep.mubr.bf16.mxu0 %v1482_v23 }
  0x66   :  { %864 = vmatpush1.bf16.msra.mxu1 %v1454_v22 }
  0xfb   :  { %v232_v24 = vpop.f32.mrb[0].mxu0  ;;  %v393_v25 = vpop.f32.mrb[0].mxu1 }
  0xfc   :  { %v234_v26 = vpop.f32.mrb[1].mxu0  ;;  %v394_v27 = vadd.f32 %v393_v25, %v1937_v3  ;;  %v395_v28 = vpop.f32.mrb[1].mxu1  ;;  %v233_v30 = vadd.f32 %v232_v24, %v1937_v3  ;;  %v486_v24 = vld [vmem:[%s2236_s0 + $0x70] sm:$0xff] }
  0xfd   :  { %v235_v32 = vadd.f32 %v234_v26, %v1937_v3 }
  0xfe   :  { %v522_v38 = vmul.f32 %v474_v29, %v394_v27  ;;  %v520_v45 = vmul.f32 %v472_v31, %v233_v30  ;;  %v484_v27 = vld [vmem:[%s2236_s0 + $0x60] sm:$0xff]  ;;  %v489_v30 = vld [vmem:[%s2236_s0 + $0x88] sm:$0xff] }
  0xff   :  { %v398_v33 = vpop.f32.mrb[2].mxu1  ;;  %v238_v35 = vpop.f32.mrb[2].mxu0  ;;  %v521_v48 = vmul.f32 %v473_v37, %v235_v32  ;;  %v487_v32 = vld [vmem:[%s2236_s0 + $0x78] sm:$0xff] }
 0x100   :  { %v399_v39 = vadd.f32 %v398_v33, %v1937_v3  ;;  %v239_v40 = vadd.f32 %v238_v35, %v1937_v3  ;;  %v240_v41 = vpop.f32.mrb[3].mxu0  ;;  %v400_v43 = vpop.f32.mrb[3].mxu1  ;;  %v485_v33 = vld [vmem:[%s2236_s0 + $0x68] sm:$0xff] }
 0x101   :  { %v241_v44 = vadd.f32 %v240_v41, %v1937_v3 }
 0x102   :  { %v525_v46 = vmul.f32 %v477_v34, %v399_v39  ;;  %v523_v47 = vmul.f32 %v475_v36, %v239_v40 }
 0x103   :  { %v524_v49 = vmul.f32 %v476_v42, %v241_v44  ;;  %v244_v50 = vpop.f32.mrb[4].mxu0  ;;  %v403_v51 = vpop.f32.mrb[4].mxu1 }
 0x104   :  { %v570_v52 = vpack.c.bf16 %v525_v46, %v522_v38  ;;  %v568_v53 = vpack.c.bf16 %v523_v47, %v520_v45  ;;  %v246_v54 = vpop.f32.mrb[5].mxu0  ;;  %v404_v55 = vadd.f32 %v403_v51, %v1937_v3  ;;  %v405_v56 = vpop.f32.mrb[5].mxu1  ;;  %v245_v59 = vadd.f32 %v244_v50, %v1937_v3  ;;  %v488_v38 = vld [vmem:[%s2236_s0 + $0x80] sm:$0xff] }
 0x105   :  { %v569_v58 = vpack.c.bf16 %v524_v49, %v521_v48  ;;  %v247_v61 = vadd.f32 %v246_v54, %v1937_v3  ;;  %v490_v56 = vld [vmem:[%s2236_s0 + $0x90] sm:$0xff] }
 0x106   :  { %1295 = vmatmul.mubr.msk.bf16.vlgmr.msra.gmra.mrb[32].mxu0 %vm808_vm1, %v570_v52  ;;  %v528_v4 = vmul.f32 %v480_v57, %v404_v55  ;;  %v526_v11 = vmul.f32 %v478_v60, %v245_v59  ;;  %v495_v59 = vld [vmem:[%s2236_s0 + $0xb8] sm:$0xff] }
 0x107   :  { %v408_v62 = vpop.f32.mrb[6].mxu1  ;;  %v250_v0 = vpop.f32.mrb[6].mxu0  ;;  %865 = vmatprep.mubr.bf16.mxu1 %v569_v58  ;;  %988 = vmatprep.mubr.bf16.mxu0 %v1482_v23  ;;  %v527_v14 = vmul.f32 %v479_v2, %v247_v61  ;;  %v493_v61 = vld [vmem:[%s2236_s0 + $0xa8] sm:$0xff] }
 0x108   :  { %v409_v5 = vadd.f32 %v408_v62, %v1937_v3  ;;  %v251_v6 = vadd.f32 %v250_v0, %v1937_v3  ;;  %v252_v7 = vpop.f32.mrb[7].mxu0  ;;  %866 = vmatmul.mubr.bf16.vlgmr.msra.gmra.mrb[32].mxu1 %v568_v53  ;;  %v410_v9 = vpop.f32.mrb[7].mxu1  ;;  %v492_v53 = vld [vmem:[%s2236_s0 + $0xa0] sm:$0xff]  ;;  %v491_v62 = vld [vmem:[%s2236_s0 + $0x98] sm:$0xff] }
 0x109   :  { %v253_v10 = vadd.f32 %v252_v7, %v1937_v3 }
 0x10a   :  { %v531_v12 = vmul.f32 %v483_v63, %v409_v5  ;;  %v529_v13 = vmul.f32 %v481_v1, %v251_v6 }
 0x10b   :  { %v530_v15 = vmul.f32 %v482_v8, %v253_v10  ;;  %v256_v16 = vpop.f32.mrb[8].mxu0  ;;  %v413_v17 = vpop.f32.mrb[8].mxu1 }
 0x10c   :  { %v573_v18 = vpack.c.bf16 %v531_v12, %v528_v4  ;;  %v258_v19 = vpop.f32.mrb[9].mxu0  ;;  %v414_v20 = vadd.f32 %v413_v17, %v1937_v3  ;;  %v415_v21 = vpop.f32.mrb[9].mxu1  ;;  %v571_v22 = vpack.c.bf16 %v529_v13, %v526_v11  ;;  %v257_v26 = vadd.f32 %v256_v16, %v1937_v3  ;;  %v494_v4 = vld [vmem:[%s2236_s0 + $0xb0] sm:$0xff] }
 0x10d   :  { %v572_v25 = vpack.c.bf16 %v530_v15, %v527_v14  ;;  %v259_v28 = vadd.f32 %v258_v19, %v1937_v3  ;;  %v498_v19 = vld [vmem:[%s2236_s0 + $0xd0] sm:$0xff] }
 0x10e   :  { %1296 = vmatmul.mubr.msk.bf16.gmra.mrb[36].mxu0 %vm808_vm1, %v573_v18  ;;  %v534_v34 = vmul.f32 %v486_v24, %v414_v20  ;;  %v532_v41 = vmul.f32 %v484_v27, %v257_v26  ;;  %v501_v26 = vld [vmem:[%s2236_s0 + $0xe8] sm:$0xff] }
 0x10f   :  { %v418_v29 = vpop.f32.mrb[10].mxu1  ;;  %v262_v31 = vpop.f32.mrb[10].mxu0  ;;  %875 = vmatprep.mubr.bf16.mxu1 %v572_v25  ;;  %998 = vmatprep.mubr.bf16.mxu0 %v1482_v23  ;;  %v533_v44 = vmul.f32 %v485_v33, %v259_v28  ;;  %v499_v28 = vld [vmem:[%s2236_s0 + $0xd8] sm:$0xff] }
 0x110   :  { %v419_v35 = vadd.f32 %v418_v29, %v1937_v3  ;;  %v263_v36 = vadd.f32 %v262_v31, %v1937_v3  ;;  %v264_v37 = vpop.f32.mrb[11].mxu0  ;;  %876 = vmatmul.mubr.bf16.gmra.mrb[36].mxu1 %v571_v22  ;;  %v420_v39 = vpop.f32.mrb[11].mxu1  ;;  %v496_v22 = vld [vmem:[%s2236_s0 + $0xc0] sm:$0xff]  ;;  %v497_v29 = vld [vmem:[%s2236_s0 + $0xc8] sm:$0xff] }
 0x111   :  { %v265_v40 = vadd.f32 %v264_v37, %v1937_v3 }
 0x112   :  { %v537_v42 = vmul.f32 %v489_v30, %v419_v35  ;;  %v535_v43 = vmul.f32 %v487_v32, %v263_v36 }
 0x113   :  { %v536_v45 = vmul.f32 %v488_v38, %v265_v40  ;;  %v268_v46 = vpop.f32.mrb[12].mxu0  ;;  %v423_v47 = vpop.f32.mrb[12].mxu1 }
 0x114   :  { %v576_v48 = vpack.c.bf16 %v537_v42, %v534_v34  ;;  %v270_v49 = vpop.f32.mrb[13].mxu0  ;;  %v424_v50 = vadd.f32 %v423_v47, %v1937_v3  ;;  %v425_v51 = vpop.f32.mrb[13].mxu1  ;;  %v574_v52 = vpack.c.bf16 %v535_v43, %v532_v41  ;;  %v269_v55 = vadd.f32 %v268_v46, %v1937_v3  ;;  %v500_v34 = vld [vmem:[%s2236_s0 + $0xe0] sm:$0xff] }
 0x115   :  { %v575_v54 = vpack.c.bf16 %v536_v45, %v533_v44  ;;  %v271_v57 = vadd.f32 %v270_v49, %v1937_v3  ;;  %v504_v49 = vld [vmem:[%s2236_s0 + $0x100] sm:$0xff] }
 0x116   :  { %1297 = vmatmul.mubr.msk.bf16.gmra.mrb[40].mxu0 %vm808_vm1, %v576_v48  ;;  %v540_v63 = vmul.f32 %v492_v53, %v424_v50  ;;  %v538_v7 = vmul.f32 %v490_v56, %v269_v55  ;;  %v507_v55 = vld [vmem:[%s2236_s0 + $0x118] sm:$0xff] }
 0x117   :  { %v428_v58 = vpop.f32.mrb[14].mxu1  ;;  %v274_v60 = vpop.f32.mrb[14].mxu0  ;;  %885 = vmatprep.mubr.bf16.mxu1 %v575_v54  ;;  %1008 = vmatprep.mubr.bf16.mxu0 %v1482_v23  ;;  %v539_v10 = vmul.f32 %v491_v62, %v271_v57  ;;  %v505_v57 = vld [vmem:[%s2236_s0 + $0x108] sm:$0xff] }
 0x118   :  { %v429_v0 = vadd.f32 %v428_v58, %v1937_v3  ;;  %v275_v1 = vadd.f32 %v274_v60, %v1937_v3  ;;  %v276_v2 = vpop.f32.mrb[15].mxu0  ;;  %886 = vmatmul.mubr.bf16.gmra.mrb[40].mxu1 %v574_v52  ;;  %v430_v5 = vpop.f32.mrb[15].mxu1  ;;  %v502_v52 = vld [vmem:[%s2236_s0 + $0xf0] sm:$0xff]  ;;  %v503_v58 = vld [vmem:[%s2236_s0 + $0xf8] sm:$0xff] }
 0x119   :  { %v277_v6 = vadd.f32 %v276_v2, %v1937_v3 }
 0x11a   :  { %v543_v8 = vmul.f32 %v495_v59, %v429_v0  ;;  %v541_v9 = vmul.f32 %v493_v61, %v275_v1 }
 0x11b   :  { %v542_v11 = vmul.f32 %v494_v4, %v277_v6  ;;  %v280_v12 = vpop.f32.mrb[16].mxu0  ;;  %v433_v13 = vpop.f32.mrb[16].mxu1 }
 0x11c   :  { %v579_v14 = vpack.c.bf16 %v543_v8, %v540_v63  ;;  %v282_v15 = vpop.f32.mrb[17].mxu0  ;;  %v434_v16 = vadd.f32 %v433_v13, %v1937_v3  ;;  %v435_v17 = vpop.f32.mrb[17].mxu1  ;;  %v577_v18 = vpack.c.bf16 %v541_v9, %v538_v7  ;;  %v281_v21 = vadd.f32 %v280_v12, %v1937_v3  ;;  %v506_v63 = vld [vmem:[%s2236_s0 + $0x110] sm:$0xff] }
 0x11d   :  { %v578_v20 = vpack.c.bf16 %v542_v11, %v539_v10  ;;  %v283_v24 = vadd.f32 %v282_v15, %v1937_v3  ;;  %v510_v15 = vld [vmem:[%s2236_s0 + $0x130] sm:$0xff] }
 0x11e   :  { %1298 = vmatmul.mubr.msk.bf16.gmra.mrb[44].mxu0 %vm808_vm1, %v579_v14  ;;  %v546_v30 = vmul.f32 %v498_v19, %v434_v16  ;;  %v544_v37 = vmul.f32 %v496_v22, %v281_v21  ;;  %v513_v21 = vld [vmem:[%s2236_s0 + $0x148] sm:$0xff] }
 0x11f   :  { %v438_v25 = vpop.f32.mrb[18].mxu1  ;;  %v286_v27 = vpop.f32.mrb[18].mxu0  ;;  %895 = vmatprep.mubr.bf16.mxu1 %v578_v20  ;;  %1018 = vmatprep.mubr.bf16.mxu0 %v1482_v23  ;;  %v545_v40 = vmul.f32 %v497_v29, %v283_v24  ;;  %v511_v24 = vld [vmem:[%s2236_s0 + $0x138] sm:$0xff] }
 0x120   :  { %v439_v31 = vadd.f32 %v438_v25, %v1937_v3  ;;  %v287_v32 = vadd.f32 %v286_v27, %v1937_v3  ;;  %v288_v33 = vpop.f32.mrb[19].mxu0  ;;  %896 = vmatmul.mubr.bf16.gmra.mrb[44].mxu1 %v577_v18  ;;  %v440_v35 = vpop.f32.mrb[19].mxu1  ;;  %v508_v18 = vld [vmem:[%s2236_s0 + $0x120] sm:$0xff]  ;;  %v509_v25 = vld [vmem:[%s2236_s0 + $0x128] sm:$0xff] }
 0x121   :  { %v289_v36 = vadd.f32 %v288_v33, %v1937_v3 }
 0x122   :  { %v549_v38 = vmul.f32 %v501_v26, %v439_v31  ;;  %v547_v39 = vmul.f32 %v499_v28, %v287_v32 }
 0x123   :  { %v548_v41 = vmul.f32 %v500_v34, %v289_v36  ;;  %v292_v42 = vpop.f32.mrb[20].mxu0  ;;  %v443_v43 = vpop.f32.mrb[20].mxu1 }
 0x124   :  { %v582_v44 = vpack.c.bf16 %v549_v38, %v546_v30  ;;  %v294_v45 = vpop.f32.mrb[21].mxu0  ;;  %v444_v46 = vadd.f32 %v443_v43, %v1937_v3  ;;  %v445_v47 = vpop.f32.mrb[21].mxu1  ;;  %v580_v48 = vpack.c.bf16 %v547_v39, %v544_v37  ;;  %v293_v51 = vadd.f32 %v292_v42, %v1937_v3  ;;  %v512_v30 = vld [vmem:[%s2236_s0 + $0x140] sm:$0xff] }
 0x125   :  { %v581_v50 = vpack.c.bf16 %v548_v41, %v545_v40  ;;  %v295_v53 = vadd.f32 %v294_v45, %v1937_v3  ;;  %v516_v45 = vld [vmem:[%s2236_s0 + $0x160] sm:$0xff] }
 0x126   :  { %1299 = vmatmul.mubr.msk.bf16.gmra.mrb[48].mxu0 %vm808_vm1, %v582_v44  ;;  %v552_v59 = vmul.f32 %v504_v49, %v444_v46  ;;  %v550_v2 = vmul.f32 %v502_v52, %v293_v51  ;;  %v519_v51 = vld [vmem:[%s2236_s0 + $0x178] sm:$0xff] }
 0x127   :  { %v448_v54 = vpop.f32.mrb[22].mxu1  ;;  %v298_v56 = vpop.f32.mrb[22].mxu0  ;;  %905 = vmatprep.mubr.bf16.mxu1 %v581_v50  ;;  %1028 = vmatprep.mubr.bf16.mxu0 %v1482_v23  ;;  %v551_v6 = vmul.f32 %v503_v58, %v295_v53  ;;  %v517_v53 = vld [vmem:[%s2236_s0 + $0x168] sm:$0xff] }
 0x128   :  { %v449_v60 = vadd.f32 %v448_v54, %v1937_v3  ;;  %v299_v61 = vadd.f32 %v298_v56, %v1937_v3  ;;  %v300_v62 = vpop.f32.mrb[23].mxu0  ;;  %906 = vmatmul.mubr.bf16.gmra.mrb[48].mxu1 %v580_v48  ;;  %v450_v0 = vpop.f32.mrb[23].mxu1  ;;  %v514_v48 = vld [vmem:[%s2236_s0 + $0x150] sm:$0xff]  ;;  %v515_v54 = vld [vmem:[%s2236_s0 + $0x158] sm:$0xff] }
 0x129   :  { %v301_v1 = vadd.f32 %v300_v62, %v1937_v3 }
 0x12a   :  { %v555_v4 = vmul.f32 %v507_v55, %v449_v60  ;;  %v553_v5 = vmul.f32 %v505_v57, %v299_v61 }
 0x12b   :  { %v554_v7 = vmul.f32 %v506_v63, %v301_v1  ;;  %v304_v8 = vpop.f32.mrb[24].mxu0  ;;  %v453_v9 = vpop.f32.mrb[24].mxu1 }
 0x12c   :  { %v585_v10 = vpack.c.bf16 %v555_v4, %v552_v59  ;;  %v306_v11 = vpop.f32.mrb[25].mxu0  ;;  %v454_v12 = vadd.f32 %v453_v9, %v1937_v3  ;;  %v455_v13 = vpop.f32.mrb[25].mxu1  ;;  %v583_v14 = vpack.c.bf16 %v553_v5, %v550_v2  ;;  %v305_v17 = vadd.f32 %v304_v8, %v1937_v3  ;;  %v518_v59 = vld [vmem:[%s2236_s0 + $0x170] sm:$0xff]  ;;  %v1059_v9 = vld [vmem:[%s2241_s5] sm:$0x3]  ;;  %s1483_s5 = smov [#allocation3]  }
 0x12d   :  { %v584_v16 = vpack.c.bf16 %v554_v7, %v551_v6  ;;  %v307_v19 = vadd.f32 %v306_v11, %v1937_v3  ;;  %v1061_v6 = vlaneseq  ;;  %v1103_v11 = vld [vmem:[%s2242_s6] sm:$0x3]  ;;  %s1216_s6 = sshll.u32 %s1483_s5, 4  ;;  %s1217_s6 = int_to_ptr.vmem [resolvable:$true] %s1216_s6 }
 0x12e   :  { %1300 = vmatmul.mubr.msk.bf16.gmra.mrb[52].mxu0 %vm808_vm1, %v585_v10  ;;  %v558_v26 = vmul.f32 %v510_v15, %v454_v12  ;;  %v556_v33 = vmul.f32 %v508_v18, %v305_v17  ;;  %s1457_s25 = scalar_lea.vmem %s1217_s6, 4096  ;;  %p1462_p1 = scmp.lt.s32.totalorder %s1217_s6, %s1217_s6 }
 0x12f   :  { %v458_v20 = vpop.f32.mrb[26].mxu1  ;;  %v310_v22 = vpop.f32.mrb[26].mxu0  ;;  %915 = vmatprep.mubr.bf16.mxu1 %v584_v16  ;;  %1038 = vmatprep.mubr.bf16.mxu0 %v1482_v23  ;;  %v557_v36 = vmul.f32 %v509_v25, %v307_v19  ;;  %v1062_v7 = vshrl.u32 %v1061_v6, 7  ;;  %p1458_p0 = scmp.ne.s32.totalorder %s1217_s6, %s1457_s25  ;;  %p1463_p2 = scmp.lt.s32.totalorder %s1457_s25, %s1457_s25 }
 0x130   :  { %v459_v27 = vadd.f32 %v458_v20, %v1937_v3  ;;  %v311_v28 = vadd.f32 %v310_v22, %v1937_v3  ;;  %v312_v29 = vpop.f32.mrb[27].mxu0  ;;  %916 = vmatmul.mubr.bf16.gmra.mrb[52].mxu1 %v583_v14  ;;  %v460_v31 = vpop.f32.mrb[27].mxu1 }
 0x131   :  { %v313_v32 = vadd.f32 %v312_v29, %v1937_v3  ;;  %v1063_v8 = vsub.s32 0, %v1062_v7  ;;  %p1464_p3 = por %p1463_p2, %p1462_p1 }
 0x132   :  { %v561_v34 = vmul.f32 %v513_v21, %v459_v27  ;;  %v559_v35 = vmul.f32 %v511_v24, %v311_v28 }
 0x133   :  { %v560_v37 = vmul.f32 %v512_v30, %v313_v32  ;;  %v316_v38 = vpop.f32.mrb[28].mxu0  ;;  %v463_v39 = vpop.f32.mrb[28].mxu1  ;;  %v2152_v13 = vrot.slane %v1059_v9, %v1063_v8  ;;  %v2156_v18 = vrot.slane %v1103_v11, %v1063_v8  ;;  %p1465_p4 = pnand %p1464_p3, %p1458_p0 }
 0x134   :  { %v588_v40 = vpack.c.bf16 %v561_v34, %v558_v26  ;;  %v318_v41 = vpop.f32.mrb[29].mxu0  ;;  %v464_v42 = vadd.f32 %v463_v39, %v1937_v3  ;;  %v465_v43 = vpop.f32.mrb[29].mxu1  ;;  %v586_v44 = vpack.c.bf16 %v559_v35, %v556_v33  ;;  %v317_v47 = vadd.f32 %v316_v38, %v1937_v3 }
 0x135   :  { %v587_v46 = vpack.c.bf16 %v560_v37, %v557_v36  ;;  %v319_v49 = vadd.f32 %v318_v41, %v1937_v3 }
 0x136   :  { %1301 = vmatmul.mubr.msk.bf16.gmra.mrb[56].mxu0 %vm808_vm1, %v588_v40  ;;  %v564_v55 = vmul.f32 %v516_v45, %v464_v42  ;;  %v562_v62 = vmul.f32 %v514_v48, %v317_v47 }
 0x137   :  { %v468_v50 = vpop.f32.mrb[30].mxu1  ;;  %v322_v52 = vpop.f32.mrb[30].mxu0  ;;  %925 = vmatprep.mubr.bf16.mxu1 %v587_v46  ;;  %1048 = vmatprep.mubr.bf16.mxu0 %v1482_v23  ;;  %v563_v0 = vmul.f32 %v515_v54, %v319_v49 }
 0x138   :  { %v469_v56 = vadd.f32 %v468_v50, %v1937_v3  ;;  %v323_v57 = vadd.f32 %v322_v52, %v1937_v3  ;;  %v324_v58 = vpop.f32.mrb[31].mxu0  ;;  %926 = vmatmul.mubr.bf16.gmra.mrb[56].mxu1 %v586_v44  ;;  %v470_v60 = vpop.f32.mrb[31].mxu1 }
 0x139   :  { %v325_v61 = vadd.f32 %v324_v58, %v1937_v3  ;;  %v1067_v3 = vsub.s32 1, %v1062_v7 }
 0x13a   :  { %v567_v23 = vmul.f32 %v519_v51, %v469_v56  ;;  %v565_v63 = vmul.f32 %v517_v53, %v323_v57 }
 0x13b   :  { %v566_v1 = vmul.f32 %v518_v59, %v325_v61  ;;  %v2154_v16 = vrot.slane %v1059_v9, %v1067_v3  ;;  %v2158_v22 = vrot.slane %v1103_v11, %v1067_v3 }
 0x13c   :  { %v591_v2 = vpack.c.bf16 %v567_v23, %v564_v55  ;;  %v589_v4 = vpack.c.bf16 %v565_v63, %v562_v62 }
 0x13d   :  { %v590_v5 = vpack.c.bf16 %v566_v1, %v563_v0 }
 0x13e   :  { %1302 = vmatmul.mubr.msk.bf16.gmra.mrb[60].mxu0 %vm808_vm1, %v591_v2 }
 0x13f   :  { %935 = vmatprep.mubr.bf16.mxu1 %v590_v5 }
 0x140   :  { %936 = vmatmul.mubr.bf16.gmra.mrb[60].mxu1 %v589_v4 }
 0x1d9   :  { %v980_v10 = vpop.f32.mrb[32].mxu0 }
 0x1da   :  { %v982_v12 = vpop.f32.mrb[33].mxu0 }
 0x1db   :  { %v984_v14 = vpop.f32.mrb[34].mxu0  ;;  %v867_v15 = vpop.f32.mrb[32].mxu1 }
 0x1dc   :  { %v981_v17 = vadd.f32 %v980_v10, %v867_v15  ;;  %v986_v19 = vpop.f32.mrb[35].mxu0  ;;  %v869_v20 = vpop.f32.mrb[33].mxu1 }
 0x1dd   :  { %v983_v21 = vadd.f32 %v982_v12, %v869_v20  ;;  %v871_v24 = vpop.f32.mrb[34].mxu1 }
 0x1de   :  { %v1071_v25 = vmul.f32 %v2152_v13, %v981_v17  ;;  %v985_v26 = vadd.f32 %v984_v14, %v871_v24  ;;  %v873_v27 = vpop.f32.mrb[35].mxu1 }
 0x1df   :  { %v1072_v28 = vmul.f32 %v2154_v16, %v983_v21  ;;  %v987_v29 = vadd.f32 %v986_v19, %v873_v27 }
 0x1e0   :  { %v1115_v30 = vadd.f32 %v2156_v18, %v1071_v25  ;;  %v1073_v31 = vmul.f32 %v2152_v13, %v985_v26 }
 0x1e1   :  { %v1116_v32 = vadd.f32 %v2158_v22, %v1072_v28  ;;  %v1074_v33 = vmul.f32 %v2154_v16, %v987_v29  ;;  %v990_v34 = vpop.f32.mrb[36].mxu0 }
 0x1e2   :  { %v1147_v35 = vmax.f32 %v1115_v30, 0.0  ;;  %v1117_v36 = vadd.f32 %v2156_v18, %v1073_v31  ;;  %v992_v37 = vpop.f32.mrb[37].mxu0 }
 0x1e3   :  { %v1148_v38 = vmax.f32 %v1116_v32, 0.0  ;;  %v1118_v39 = vadd.f32 %v2158_v22, %v1074_v33  ;;  %v994_v40 = vpop.f32.mrb[38].mxu0  ;;  %v877_v41 = vpop.f32.mrb[36].mxu1 }
 0x1e4   :  { %1179 = vst [vmem:[#allocation3] sm:$0xff] %v1147_v35  ;;  %v1149_v42 = vmax.f32 %v1117_v36, 0.0  ;;  %v991_v43 = vadd.f32 %v990_v34, %v877_v41  ;;  %v996_v44 = vpop.f32.mrb[39].mxu0  ;;  %v879_v45 = vpop.f32.mrb[37].mxu1 }
 0x1e5   :  { %1180 = vst [vmem:[#allocation3 + $0x8] sm:$0xff] %v1148_v38  ;;  %v1150_v46 = vmax.f32 %v1118_v39, 0.0  ;;  %v993_v47 = vadd.f32 %v992_v37, %v879_v45  ;;  %v881_v48 = vpop.f32.mrb[38].mxu1 }
 0x1e6   :  { %1181 = vst [vmem:[#allocation3 + $0x10] sm:$0xff] %v1149_v42  ;;  %v1075_v49 = vmul.f32 %v2152_v13, %v991_v43  ;;  %v995_v50 = vadd.f32 %v994_v40, %v881_v48  ;;  %v883_v51 = vpop.f32.mrb[39].mxu1 }
 0x1e7   :  { %1182 = vst [vmem:[#allocation3 + $0x18] sm:$0xff] %v1150_v46  ;;  %v1076_v52 = vmul.f32 %v2154_v16, %v993_v47  ;;  %v997_v53 = vadd.f32 %v996_v44, %v883_v51 }
 0x1e8   :  { %v1119_v54 = vadd.f32 %v2156_v18, %v1075_v49  ;;  %v1077_v55 = vmul.f32 %v2152_v13, %v995_v50 }
 0x1e9   :  { %v1120_v56 = vadd.f32 %v2158_v22, %v1076_v52  ;;  %v1078_v57 = vmul.f32 %v2154_v16, %v997_v53  ;;  %v1000_v58 = vpop.f32.mrb[40].mxu0 }
 0x1ea   :  { %v1151_v59 = vmax.f32 %v1119_v54, 0.0  ;;  %v1121_v60 = vadd.f32 %v2156_v18, %v1077_v55  ;;  %v1002_v61 = vpop.f32.mrb[41].mxu0 }
 0x1eb   :  { %v1152_v62 = vmax.f32 %v1120_v56, 0.0  ;;  %v1122_v23 = vadd.f32 %v2158_v22, %v1078_v57  ;;  %v1004_v63 = vpop.f32.mrb[42].mxu0  ;;  %v887_v0 = vpop.f32.mrb[40].mxu1 }
 0x1ec   :  { %1183 = vst [vmem:[#allocation3 + $0x20] sm:$0xff] %v1151_v59  ;;  %v1153_v1 = vmax.f32 %v1121_v60, 0.0  ;;  %v1001_v2 = vadd.f32 %v1000_v58, %v887_v0  ;;  %v1006_v4 = vpop.f32.mrb[43].mxu0  ;;  %v889_v5 = vpop.f32.mrb[41].mxu1 }
 0x1ed   :  { %1184 = vst [vmem:[#allocation3 + $0x28] sm:$0xff] %v1152_v62  ;;  %v1154_v6 = vmax.f32 %v1122_v23, 0.0  ;;  %v1003_v7 = vadd.f32 %v1002_v61, %v889_v5  ;;  %v891_v8 = vpop.f32.mrb[42].mxu1 }
 0x1ee   :  { %1185 = vst [vmem:[#allocation3 + $0x30] sm:$0xff] %v1153_v1  ;;  %v1079_v9 = vmul.f32 %v2152_v13, %v1001_v2  ;;  %v1005_v3 = vadd.f32 %v1004_v63, %v891_v8  ;;  %v893_v10 = vpop.f32.mrb[43].mxu1 }
 0x1ef   :  { %1186 = vst [vmem:[#allocation3 + $0x38] sm:$0xff] %v1154_v6  ;;  %v1080_v11 = vmul.f32 %v2154_v16, %v1003_v7  ;;  %v1007_v12 = vadd.f32 %v1006_v4, %v893_v10 }
 0x1f0   :  { %v1123_v14 = vadd.f32 %v2156_v18, %v1079_v9  ;;  %v1081_v15 = vmul.f32 %v2152_v13, %v1005_v3 }
 0x1f1   :  { %v1124_v17 = vadd.f32 %v2158_v22, %v1080_v11  ;;  %v1082_v19 = vmul.f32 %v2154_v16, %v1007_v12  ;;  %v1010_v20 = vpop.f32.mrb[44].mxu0 }
 0x1f2   :  { %v1155_v21 = vmax.f32 %v1123_v14, 0.0  ;;  %v1125_v24 = vadd.f32 %v2156_v18, %v1081_v15  ;;  %v1012_v25 = vpop.f32.mrb[45].mxu0 }
 0x1f3   :  { %v1156_v26 = vmax.f32 %v1124_v17, 0.0  ;;  %v1126_v27 = vadd.f32 %v2158_v22, %v1082_v19  ;;  %v1014_v28 = vpop.f32.mrb[46].mxu0  ;;  %v897_v29 = vpop.f32.mrb[44].mxu1 }
 0x1f4   :  { %1187 = vst [vmem:[#allocation3 + $0x40] sm:$0xff] %v1155_v21  ;;  %v1157_v30 = vmax.f32 %v1125_v24, 0.0  ;;  %v1011_v31 = vadd.f32 %v1010_v20, %v897_v29  ;;  %v1016_v32 = vpop.f32.mrb[47].mxu0  ;;  %v899_v33 = vpop.f32.mrb[45].mxu1 }
 0x1f5   :  { %1188 = vst [vmem:[#allocation3 + $0x48] sm:$0xff] %v1156_v26  ;;  %v1158_v34 = vmax.f32 %v1126_v27, 0.0  ;;  %v1013_v35 = vadd.f32 %v1012_v25, %v899_v33  ;;  %v901_v36 = vpop.f32.mrb[46].mxu1 }
 0x1f6   :  { %1189 = vst [vmem:[#allocation3 + $0x50] sm:$0xff] %v1157_v30  ;;  %v1083_v37 = vmul.f32 %v2152_v13, %v1011_v31  ;;  %v1015_v38 = vadd.f32 %v1014_v28, %v901_v36  ;;  %v903_v39 = vpop.f32.mrb[47].mxu1 }
 0x1f7   :  { %1190 = vst [vmem:[#allocation3 + $0x58] sm:$0xff] %v1158_v34  ;;  %v1084_v40 = vmul.f32 %v2154_v16, %v1013_v35  ;;  %v1017_v41 = vadd.f32 %v1016_v32, %v903_v39 }
 0x1f8   :  { %v1127_v42 = vadd.f32 %v2156_v18, %v1083_v37  ;;  %v1085_v43 = vmul.f32 %v2152_v13, %v1015_v38 }
 0x1f9   :  { %v1128_v44 = vadd.f32 %v2158_v22, %v1084_v40  ;;  %v1086_v45 = vmul.f32 %v2154_v16, %v1017_v41  ;;  %v1020_v46 = vpop.f32.mrb[48].mxu0 }
 0x1fa   :  { %v1159_v47 = vmax.f32 %v1127_v42, 0.0  ;;  %v1129_v48 = vadd.f32 %v2156_v18, %v1085_v43  ;;  %v1022_v49 = vpop.f32.mrb[49].mxu0 }
 0x1fb   :  { %v1160_v50 = vmax.f32 %v1128_v44, 0.0  ;;  %v1130_v51 = vadd.f32 %v2158_v22, %v1086_v45  ;;  %v1024_v52 = vpop.f32.mrb[50].mxu0  ;;  %v907_v53 = vpop.f32.mrb[48].mxu1 }
 0x1fc   :  { %1191 = vst [vmem:[#allocation3 + $0x60] sm:$0xff] %v1159_v47  ;;  %v1161_v54 = vmax.f32 %v1129_v48, 0.0  ;;  %v1021_v55 = vadd.f32 %v1020_v46, %v907_v53  ;;  %v1026_v56 = vpop.f32.mrb[51].mxu0  ;;  %v909_v57 = vpop.f32.mrb[49].mxu1 }
 0x1fd   :  { %1192 = vst [vmem:[#allocation3 + $0x68] sm:$0xff] %v1160_v50  ;;  %v1162_v58 = vmax.f32 %v1130_v51, 0.0  ;;  %v1023_v59 = vadd.f32 %v1022_v49, %v909_v57  ;;  %v911_v60 = vpop.f32.mrb[50].mxu1 }
 0x1fe   :  { %1193 = vst [vmem:[#allocation3 + $0x70] sm:$0xff] %v1161_v54  ;;  %v1087_v61 = vmul.f32 %v2152_v13, %v1021_v55  ;;  %v1025_v62 = vadd.f32 %v1024_v52, %v911_v60  ;;  %v913_v23 = vpop.f32.mrb[51].mxu1 }
 0x1ff   :  { %1194 = vst [vmem:[#allocation3 + $0x78] sm:$0xff] %v1162_v58  ;;  %v1088_v63 = vmul.f32 %v2154_v16, %v1023_v59  ;;  %v1027_v0 = vadd.f32 %v1026_v56, %v913_v23 }
 0x200   :  { %v1131_v1 = vadd.f32 %v2156_v18, %v1087_v61  ;;  %v1089_v2 = vmul.f32 %v2152_v13, %v1025_v62 }
 0x201   :  { %v1132_v4 = vadd.f32 %v2158_v22, %v1088_v63  ;;  %v1090_v5 = vmul.f32 %v2154_v16, %v1027_v0  ;;  %v1030_v6 = vpop.f32.mrb[52].mxu0 }
 0x202   :  { %v1163_v7 = vmax.f32 %v1131_v1, 0.0  ;;  %v1133_v8 = vadd.f32 %v2156_v18, %v1089_v2  ;;  %v1032_v9 = vpop.f32.mrb[53].mxu0 }
 0x203   :  { %v1164_v3 = vmax.f32 %v1132_v4, 0.0  ;;  %v1134_v10 = vadd.f32 %v2158_v22, %v1090_v5  ;;  %v1034_v11 = vpop.f32.mrb[54].mxu0  ;;  %v917_v12 = vpop.f32.mrb[52].mxu1 }
 0x204   :  { %1195 = vst [vmem:[#allocation3 + $0x80] sm:$0xff] %v1163_v7  ;;  %v1165_v14 = vmax.f32 %v1133_v8, 0.0  ;;  %v1031_v15 = vadd.f32 %v1030_v6, %v917_v12  ;;  %v1036_v17 = vpop.f32.mrb[55].mxu0  ;;  %v919_v19 = vpop.f32.mrb[53].mxu1 }
 0x205   :  { %1196 = vst [vmem:[#allocation3 + $0x88] sm:$0xff] %v1164_v3  ;;  %v1166_v20 = vmax.f32 %v1134_v10, 0.0  ;;  %v1033_v21 = vadd.f32 %v1032_v9, %v919_v19  ;;  %v921_v24 = vpop.f32.mrb[54].mxu1 }
 0x206   :  { %1197 = vst [vmem:[#allocation3 + $0x90] sm:$0xff] %v1165_v14  ;;  %v1091_v25 = vmul.f32 %v2152_v13, %v1031_v15  ;;  %v1035_v26 = vadd.f32 %v1034_v11, %v921_v24  ;;  %v923_v27 = vpop.f32.mrb[55].mxu1 }
 0x207   :  { %1198 = vst [vmem:[#allocation3 + $0x98] sm:$0xff] %v1166_v20  ;;  %v1092_v28 = vmul.f32 %v2154_v16, %v1033_v21  ;;  %v1037_v29 = vadd.f32 %v1036_v17, %v923_v27 }
 0x208   :  { %v1135_v30 = vadd.f32 %v2156_v18, %v1091_v25  ;;  %v1093_v31 = vmul.f32 %v2152_v13, %v1035_v26 }
 0x209   :  { %v1136_v32 = vadd.f32 %v2158_v22, %v1092_v28  ;;  %v1094_v33 = vmul.f32 %v2154_v16, %v1037_v29  ;;  %v1040_v34 = vpop.f32.mrb[56].mxu0 }
 0x20a   :  { %v1167_v35 = vmax.f32 %v1135_v30, 0.0  ;;  %v1137_v36 = vadd.f32 %v2156_v18, %v1093_v31  ;;  %v1042_v37 = vpop.f32.mrb[57].mxu0 }
 0x20b   :  { %v1168_v38 = vmax.f32 %v1136_v32, 0.0  ;;  %v1138_v39 = vadd.f32 %v2158_v22, %v1094_v33  ;;  %v1044_v40 = vpop.f32.mrb[58].mxu0  ;;  %v927_v41 = vpop.f32.mrb[56].mxu1 }
 0x20c   :  { %1199 = vst [vmem:[#allocation3 + $0xa0] sm:$0xff] %v1167_v35  ;;  %v1169_v42 = vmax.f32 %v1137_v36, 0.0  ;;  %v1041_v43 = vadd.f32 %v1040_v34, %v927_v41  ;;  %v1046_v44 = vpop.f32.mrb[59].mxu0  ;;  %v929_v45 = vpop.f32.mrb[57].mxu1 }
 0x20d   :  { %1200 = vst [vmem:[#allocation3 + $0xa8] sm:$0xff] %v1168_v38  ;;  %v1170_v46 = vmax.f32 %v1138_v39, 0.0  ;;  %v1043_v47 = vadd.f32 %v1042_v37, %v929_v45  ;;  %v931_v48 = vpop.f32.mrb[58].mxu1 }
 0x20e   :  { %1201 = vst [vmem:[#allocation3 + $0xb0] sm:$0xff] %v1169_v42  ;;  %v1095_v49 = vmul.f32 %v2152_v13, %v1041_v43  ;;  %v1045_v50 = vadd.f32 %v1044_v40, %v931_v48  ;;  %v933_v51 = vpop.f32.mrb[59].mxu1 }
 0x20f   :  { %1202 = vst [vmem:[#allocation3 + $0xb8] sm:$0xff] %v1170_v46  ;;  %v1096_v52 = vmul.f32 %v2154_v16, %v1043_v47  ;;  %v1047_v53 = vadd.f32 %v1046_v44, %v933_v51 }
 0x210   :  { %v1139_v54 = vadd.f32 %v2156_v18, %v1095_v49  ;;  %v1097_v55 = vmul.f32 %v2152_v13, %v1045_v50 }
 0x211   :  { %v1140_v56 = vadd.f32 %v2158_v22, %v1096_v52  ;;  %v1098_v57 = vmul.f32 %v2154_v16, %v1047_v53  ;;  %v1050_v58 = vpop.f32.mrb[60].mxu0 }
 0x212   :  { %v1171_v59 = vmax.f32 %v1139_v54, 0.0  ;;  %v1141_v60 = vadd.f32 %v2156_v18, %v1097_v55  ;;  %v1052_v61 = vpop.f32.mrb[61].mxu0 }
 0x213   :  { %v1172_v62 = vmax.f32 %v1140_v56, 0.0  ;;  %v1142_v23 = vadd.f32 %v2158_v22, %v1098_v57  ;;  %v1054_v63 = vpop.f32.mrb[62].mxu0  ;;  %v937_v0 = vpop.f32.mrb[60].mxu1 }
 0x214   :  { %1203 = vst [vmem:[#allocation3 + $0xc0] sm:$0xff] %v1171_v59  ;;  %v1173_v1 = vmax.f32 %v1141_v60, 0.0  ;;  %v1051_v2 = vadd.f32 %v1050_v58, %v937_v0  ;;  %v1056_v4 = vpop.f32.mrb[63].mxu0  ;;  %v939_v5 = vpop.f32.mrb[61].mxu1 }
 0x215   :  { %1204 = vst [vmem:[#allocation3 + $0xc8] sm:$0xff] %v1172_v62  ;;  %v1174_v6 = vmax.f32 %v1142_v23, 0.0  ;;  %v1053_v7 = vadd.f32 %v1052_v61, %v939_v5  ;;  %v941_v8 = vpop.f32.mrb[62].mxu1 }
 0x216   :  { %1205 = vst [vmem:[#allocation3 + $0xd0] sm:$0xff] %v1173_v1  ;;  %v1099_v9 = vmul.f32 %v2152_v13, %v1051_v2  ;;  %v1055_v3 = vadd.f32 %v1054_v63, %v941_v8  ;;  %v943_v10 = vpop.f32.mrb[63].mxu1 }
 0x217   :  { %1206 = vst [vmem:[#allocation3 + $0xd8] sm:$0xff] %v1174_v6  ;;  %v1100_v11 = vmul.f32 %v2154_v16, %v1053_v7  ;;  %v1057_v12 = vadd.f32 %v1056_v4, %v943_v10 }
 0x218   :  { %v1143_v14 = vadd.f32 %v2156_v18, %v1099_v9  ;;  %v1101_v15 = vmul.f32 %v2152_v13, %v1055_v3 }
 0x219   :  { %v1144_v17 = vadd.f32 %v2158_v22, %v1100_v11  ;;  %v1102_v19 = vmul.f32 %v2154_v16, %v1057_v12 }
 0x21a   :  { %v1175_v20 = vmax.f32 %v1143_v14, 0.0  ;;  %v1145_v21 = vadd.f32 %v2156_v18, %v1101_v15 }
 0x21b   :  { %v1176_v24 = vmax.f32 %v1144_v17, 0.0  ;;  %v1146_v25 = vadd.f32 %v2158_v22, %v1102_v19 }
 0x21c   :  { %1207 = vst [vmem:[#allocation3 + $0xe0] sm:$0xff] %v1175_v20  ;;  %v1177_v26 = vmax.f32 %v1145_v21, 0.0 }
 0x21d   :  { %1208 = vst [vmem:[#allocation3 + $0xe8] sm:$0xff] %v1176_v24  ;;  %v1178_v27 = vmax.f32 %v1146_v25, 0.0 }
 0x21e   :  { %1209 = vst [vmem:[#allocation3 + $0xf0] sm:$0xff] %v1177_v26 }
 0x21f   :  { %1210 = vst [vmem:[#allocation3 + $0xf8] sm:$0xff] %v1178_v27 }
 0x220   :  { %1468 = shalt.err (!%p1465_p4)
}
 0x221   :  { %s1469_s1 = scalar_lea.hbm %s2243_s7, 4096 }
 0x222   :  { %p1470_p5 = scmp.ne.s32.totalorder %s2243_s7, %s1469_s1  ;;  %p1473_p6 = scmp.lt.u32.totalorder %s1469_s1, %s2243_s7 }
 0x224   :  { %p1475_p7 = pnand %p1473_p6, %p1470_p5 }
 0x226   :  { %1478 = shalt.err (!%p1475_p7)
}
 0x227   :  { %s1484_s9 = smov 256   ;;  %s1485_s10 = smov 16  }
 0x228   :  { %1222 = dma.vmem_to_hbm [thread:$0]  %s1217_s6, 4096, %s2243_s7, [#allocation4], %s1484_s9, %s1484_s9, %s1485_s10  }
 0x229   :  { %1479 = dma.done.wait [#allocation4], 4096  }
 0x22a   :  { %1480 = vsyncadd [#allocation4], 4294963200 }
 0x22b   :  { %1226 = vsyncpa [#allocation4], 1 }

</bundles_post_ra>
